<compile_context>
chip_gen: v6e
topology: v6e:2x2x1
jax: 0.10.0
libtpu: 0.0.40
codegen_flags: <defaults>
</compile_context>

<pallas_src>
import jax
import jax.numpy as jnp
from jax.experimental import pallas as pl
from jax.experimental.pallas import tpu as pltpu


# ---------------------------------------------------------------------------
# Pass 1: squeeze-excite path + EMA update of fixed_weights (small output).
# Grid over batch items; per step one (C, HW) slab of x is pooled and pushed
# through fc1/relu/fc2/sigmoid entirely in column form (channels on sublanes),
# accumulating the sigmoid outputs. On the last step the batch mean is folded
# into the (C, HW) EMA state.
# ---------------------------------------------------------------------------
def se_squeeze_kernel(x_ref, fw_ref, w1t_ref, b1_ref, w2_ref, b2_ref,
                      new_fw_ref, y_acc):
    # x_ref:   (1, C, HW)  one batch item (channels on sublanes, spatial on lanes)
    # fw_ref:  (C, HW)     fixed_weights state
    # w1t_ref: (C, hidden) fc1.weight transposed
    # b1_ref:  (1, hidden)
    # w2_ref:  (C, hidden) fc2.weight (PyTorch-native layout)
    # b2_ref:  (C, 1)
    # y_acc:   (C, 1)      VMEM accumulator for sum_n sigmoid(...)
    n = pl.program_id(0)

    @pl.when(n == 0)
    def _init():
        y_acc[...] = jnp.zeros_like(y_acc)

    xb = x_ref[0]                                          # (C, HW)

    # AdaptiveAvgPool2d((1,1)): mean over spatial lanes -> (C, 1) column.
    pooled = jnp.mean(xb, axis=1, keepdims=True)           # (C, 1)

    # fc1 + ReLU, as VPU broadcast-multiply + sublane reduce (the matmul is far
    # too small to be worth pushing through the MXU).
    h = jnp.sum(w1t_ref[...] * pooled, axis=0, keepdims=True) + b1_ref[...]
    h = jnp.maximum(h, 0.0)                                # (1, hidden)

    # fc2 + sigmoid: broadcast-multiply + lane reduce -> (C, 1) column.
    s = jnp.sum(w2_ref[...] * h, axis=1, keepdims=True) + b2_ref[...]
    s = jax.nn.sigmoid(s)                                  # (C, 1)

    y_acc[...] += s

    @pl.when(n == pl.num_programs(0) - 1)
    def _finalize():
        y = y_acc[...] / pl.num_programs(0)                # batch mean, (C, 1)
        # EMA update, broadcast per-channel y across the spatial lanes.
        new_fw_ref[...] = fw_ref[...] * 0.9 + y * 0.1      # (C, HW)


# ---------------------------------------------------------------------------
# Pass 2: out = new_fw * x on a flattened, lane-dense (N, C*H*W) view.
# Pure elementwise scale; both grid axes are parallel (no reduction).
# ---------------------------------------------------------------------------
def se_scale_kernel(x_ref, fw_ref, out_ref):
    # x_ref:   (row_block, col_block)
    # fw_ref:  (1, col_block)   broadcast over the batch rows
    out_ref[...] = x_ref[...] * fw_ref[...]


def _pick_block(total, base, cap):
    """Largest multiple of `base` that divides `total`, capped at `cap`.
    Falls back to `total` (a full-extent block is always legal)."""
    if total % base != 0:
        return total
    best = None
    cand = base
    limit = min(cap, total)
    while cand <= limit:
        if total % cand == 0:
            best = cand
        cand += base
    return best if best is not None else total


@jax.jit
def se_block_forward(x_nchw, fixed_weights, fc1_w, fc1_b, fc2_w, fc2_b):
    """SEBlock training-mode forward.

    Args (PyTorch layouts):
      x_nchw:        (N, C, H, W) float32
      fixed_weights: (1, C, H, W) float32  (module buffer, EMA state)
      fc1_w: (hidden, C), fc1_b: (hidden,), fc2_w: (C, hidden), fc2_b: (C,)

    Returns:
      out:        (N, C, H, W)  == updated_fixed_weights * x
      new_fw:     (1, C, H, W)  updated EMA state
    """
    N, C, H, W = x_nchw.shape
    HW = H * W
    CHW = C * HW
    hidden = fc1_w.shape[0]

    x_nchw = x_nchw.astype(jnp.float32)

    # All reshapes below are contiguity-preserving views of the NCHW buffers:
    # no transposes, no extra full-tensor HBM round trips.
    x3 = x_nchw.reshape(N, C, HW)
    fw2 = fixed_weights.astype(jnp.float32).reshape(C, HW)

    # ---- Pass 1: pooled -> fc1 -> relu -> fc2 -> sigmoid -> batch mean -> EMA.
    new_fw = pl.pallas_call(
        se_squeeze_kernel,
        out_shape=jax.ShapeDtypeStruct((C, HW), jnp.float32),
        grid=(N,),
        in_specs=[
            pl.BlockSpec((1, C, HW), lambda n: (n, 0, 0)),   # x, one batch item/step
            pl.BlockSpec((C, HW), lambda n: (0, 0)),         # fixed_weights
            pl.BlockSpec((C, hidden), lambda n: (0, 0)),     # fc1_w.T
            pl.BlockSpec((1, hidden), lambda n: (0, 0)),     # fc1_b
            pl.BlockSpec((C, hidden), lambda n: (0, 0)),     # fc2_w
            pl.BlockSpec((C, 1), lambda n: (0, 0)),          # fc2_b
        ],
        out_specs=pl.BlockSpec((C, HW), lambda n: (0, 0)),
        scratch_shapes=[pltpu.VMEM((C, 1), jnp.float32)],
        input_output_aliases={1: 0},   # EMA state updated in place (fw -> new_fw)
        compiler_params=pltpu.CompilerParams(
            dimension_semantics=("arbitrary",)),
    )(
        x3,
        fw2,
        fc1_w.astype(jnp.float32).T,                  # (C, hidden), tiny transpose
        fc1_b.astype(jnp.float32).reshape(1, hidden),
        fc2_w.astype(jnp.float32),                    # (C, hidden) already
        fc2_b.astype(jnp.float32).reshape(C, 1),
    )

    # ---- Pass 2: out = new_fw * x, flattened lane-dense layout.
    x2 = x_nchw.reshape(N, CHW)            # free view, last dim = C*H*W lanes
    fw_flat = new_fw.reshape(1, CHW)       # free view of the (C, HW) output

    row_block = _pick_block(N, 8, 256)
    # Keep >= 2 column blocks when possible so v7x can split across both TCs.
    col_block = _pick_block(CHW, 128, max(128, CHW // 2))

    out = pl.pallas_call(
        se_scale_kernel,
        out_shape=jax.ShapeDtypeStruct((N, CHW), jnp.float32),
        grid=(N // row_block, CHW // col_block),
        in_specs=[
            pl.BlockSpec((row_block, col_block), lambda i, j: (i, j)),
            pl.BlockSpec((1, col_block), lambda i, j: (0, j)),
        ],
        out_specs=pl.BlockSpec((row_block, col_block), lambda i, j: (i, j)),
        compiler_params=pltpu.CompilerParams(
            dimension_semantics=("parallel", "parallel")),
    )(x2, fw_flat)

    return out.reshape(N, C, H, W), new_fw.reshape(1, C, H, W)


if __name__ == "__main__":
    # Module config: SEBlock(n_channels=64, h=8, w=8, ratio=16) -> hidden = 4
    N, C, H, W = 2, 64, 8, 8
    ratio = 16
    hidden = C // ratio

    key = jax.random.PRNGKey(0)
    k_x, k_w1, k_b1, k_w2, k_b2 = jax.random.split(key, 5)

    x = jax.random.normal(k_x, (N, C, H, W), dtype=jnp.float32)

    # fixed_weights = ones (as in __init__); fc weights in PyTorch layout with
    # PyTorch-style uniform init bounds.
    fixed_weights = jnp.ones((1, C, H, W), dtype=jnp.float32)
    bound1 = 1.0 / (C ** 0.5)
    bound2 = 1.0 / (hidden ** 0.5)
    fc1_w = jax.random.uniform(k_w1, (hidden, C), jnp.float32, -bound1, bound1)
    fc1_b = jax.random.uniform(k_b1, (hidden,), jnp.float32, -bound1, bound1)
    fc2_w = jax.random.uniform(k_w2, (C, hidden), jnp.float32, -bound2, bound2)
    fc2_b = jax.random.uniform(k_b2, (C,), jnp.float32, -bound2, bound2)

    # Pure-JAX reference (training-mode forward), computed before the kernel
    # call so the in-place-aliased EMA state cannot interfere with it.
    pooled_ref = x.reshape(N, C, -1).mean(-1)                       # (N, C)
    h_ref = jnp.maximum(pooled_ref @ fc1_w.T + fc1_b, 0.0)          # (N, hidden)
    s_ref = jax.nn.sigmoid(h_ref @ fc2_w.T + fc2_b)                 # (N, C)
    y_ref = s_ref.mean(0)[None, :, None, None]                      # (1, C, 1, 1)
    new_fw_ref = fixed_weights * 0.9 + y_ref * 0.1                  # (1, C, H, W)
    out_ref = new_fw_ref * x
    out_ref, new_fw_ref = jax.block_until_ready((out_ref, new_fw_ref))

    out, new_fw = se_block_forward(x, fixed_weights, fc1_w, fc1_b, fc2_w, fc2_b)
    jax.block_until_ready(out)
    jax.block_until_ready(new_fw)

    assert jnp.allclose(new_fw, new_fw_ref, atol=1e-5, rtol=1e-5)
    assert jnp.allclose(out, out_ref, atol=1e-5, rtol=1e-5)
    print("KERNEL_OK")
</pallas_src>

<mosaic_0001>
module attributes {stable_mosaic.version = 11 : i64} {
  func.func @se_squeeze_kernel(%arg0: i32, %arg1: memref<1x64x64xf32, #tpu.memory_space<vmem>>, %arg2: memref<64x64xf32, #tpu.memory_space<vmem>>, %arg3: memref<64x4xf32, #tpu.memory_space<vmem>>, %arg4: memref<1x4xf32, #tpu.memory_space<vmem>>, %arg5: memref<64x4xf32, #tpu.memory_space<vmem>>, %arg6: memref<64x1xf32, #tpu.memory_space<vmem>>, %arg7: memref<64x64xf32, #tpu.memory_space<vmem>>, %arg8: memref<64x1xf32, #tpu.memory_space<vmem>>) attributes {dimension_semantics = [#tpu.dimension_semantics<arbitrary>], iteration_bounds = array<i64: 2>, scalar_prefetch = 0 : i64, scratch_operands = 1 : i64, tpu.core_type = #tpu.core_type<tc>, window_params = [{transform_indices = @transform_0, window_bounds = array<i64: 1, 64, 64>}, {pipeline_mode = #tpu.pipeline_mode<synchronous>, transform_indices = @transform_1, window_bounds = array<i64: 64, 64>}, {pipeline_mode = #tpu.pipeline_mode<synchronous>, transform_indices = @transform_2, window_bounds = array<i64: 64, 4>}, {pipeline_mode = #tpu.pipeline_mode<synchronous>, transform_indices = @transform_3, window_bounds = array<i64: 1, 4>}, {pipeline_mode = #tpu.pipeline_mode<synchronous>, transform_indices = @transform_4, window_bounds = array<i64: 64, 4>}, {pipeline_mode = #tpu.pipeline_mode<synchronous>, transform_indices = @transform_5, window_bounds = array<i64: 64, 1>}, {pipeline_mode = #tpu.pipeline_mode<synchronous>, transform_indices = @transform_6, window_bounds = array<i64: 64, 64>}]} {
    %c0_i32 = arith.constant 0 : i32
    %0 = arith.cmpi eq, %arg0, %c0_i32 : i32
    %1 = arith.extui %0 : i1 to i32
    %c0_i32_0 = arith.constant 0 : i32
    %2 = arith.cmpi ne, %1, %c0_i32_0 : i32
    scf.if %2 {
      %cst_21 = arith.constant 0.000000e+00 : f32
      %36 = vector.broadcast %cst_21 : f32 to vector<64x1xf32>
      %c0_22 = arith.constant 0 : index
      %c0_23 = arith.constant 0 : index
      %37 = vector.load %arg8[%c0_22, %c0_23] : memref<64x1xf32, #tpu.memory_space<vmem>>, vector<64x1xf32>
      tpu.vector_store %arg8[%c0_22, %c0_23], %36 {strides = array<i32>} : memref<64x1xf32, #tpu.memory_space<vmem>>, vector<64x1xf32>,
    } else {
    }
    %c0 = arith.constant 0 : index
    %c0_1 = arith.constant 0 : index
    %c0_2 = arith.constant 0 : index
    %3 = vector.load %arg1[%c0, %c0_1, %c0_2] : memref<1x64x64xf32, #tpu.memory_space<vmem>>, vector<1x64x64xf32>
    %4 = vector.shape_cast %3 : vector<1x64x64xf32> to vector<64x64xf32>
    %cst = arith.constant dense<0.000000e+00> : vector<64xf32>
    %5 = vector.multi_reduction <add>, %4, %cst [1] : vector<64x64xf32> to vector<64xf32>
    %6 = vector.shape_cast %5 : vector<64xf32> to vector<64x1xf32>
    %cst_3 = arith.constant 6.400000e+01 : f32
    %7 = vector.broadcast %cst_3 : f32 to vector<64x1xf32>
    %8 = arith.divf %6, %7 : vector<64x1xf32>
    %c0_4 = arith.constant 0 : index
    %c0_5 = arith.constant 0 : index
    %9 = vector.load %arg3[%c0_4, %c0_5] : memref<64x4xf32, #tpu.memory_space<vmem>>, vector<64x4xf32>
    %10 = vector.broadcast %8 : vector<64x1xf32> to vector<64x4xf32>
    %11 = arith.mulf %9, %10 : vector<64x4xf32>
    %cst_6 = arith.constant dense<0.000000e+00> : vector<4xf32>
    %12 = vector.multi_reduction <add>, %11, %cst_6 [0] : vector<64x4xf32> to vector<4xf32>
    %13 = vector.shape_cast %12 : vector<4xf32> to vector<1x4xf32>
    %c0_7 = arith.constant 0 : index
    %c0_8 = arith.constant 0 : index
    %14 = vector.load %arg4[%c0_7, %c0_8] : memref<1x4xf32, #tpu.memory_space<vmem>>, vector<1x4xf32>
    %15 = arith.addf %13, %14 : vector<1x4xf32>
    %cst_9 = arith.constant 0.000000e+00 : f32
    %16 = vector.broadcast %cst_9 : f32 to vector<1x4xf32>
    %17 = arith.maximumf %15, %16 : vector<1x4xf32>
    %c0_10 = arith.constant 0 : index
    %c0_11 = arith.constant 0 : index
    %18 = vector.load %arg5[%c0_10, %c0_11] : memref<64x4xf32, #tpu.memory_space<vmem>>, vector<64x4xf32>
    %19 = vector.broadcast %17 : vector<1x4xf32> to vector<64x4xf32>
    %20 = arith.mulf %18, %19 : vector<64x4xf32>
    %cst_12 = arith.constant dense<0.000000e+00> : vector<64xf32>
    %21 = vector.multi_reduction <add>, %20, %cst_12 [1] : vector<64x4xf32> to vector<64xf32>
    %22 = vector.shape_cast %21 : vector<64xf32> to vector<64x1xf32>
    %c0_13 = arith.constant 0 : index
    %c0_14 = arith.constant 0 : index
    %23 = vector.load %arg6[%c0_13, %c0_14] : memref<64x1xf32, #tpu.memory_space<vmem>>, vector<64x1xf32>
    %24 = arith.addf %22, %23 : vector<64x1xf32>
    %25 = arith.negf %24 : vector<64x1xf32>
    %26 = math.exp %25 : vector<64x1xf32>
    %cst_15 = arith.constant 1.000000e+00 : f32
    %27 = vector.broadcast %cst_15 : f32 to vector<64x1xf32>
    %28 = arith.addf %27, %26 : vector<64x1xf32>
    %29 = arith.divf %27, %28 : vector<64x1xf32>
    %c0_16 = arith.constant 0 : index
    %c0_17 = arith.constant 0 : index
    %30 = vector.load %arg8[%c0_16, %c0_17] : memref<64x1xf32, #tpu.memory_space<vmem>>, vector<64x1xf32>
    %31 = arith.addf %30, %29 : vector<64x1xf32>
    %c0_18 = arith.constant 0 : index
    %c0_19 = arith.constant 0 : index
    %32 = vector.load %arg8[%c0_18, %c0_19] : memref<64x1xf32, #tpu.memory_space<vmem>>, vector<64x1xf32>
    tpu.vector_store %arg8[%c0_18, %c0_19], %31 {strides = array<i32>} : memref<64x1xf32, #tpu.memory_space<vmem>>, vector<64x1xf32>,
    %c1_i32 = arith.constant 1 : i32
    %33 = arith.cmpi eq, %arg0, %c1_i32 : i32
    %34 = arith.extui %33 : i1 to i32
    %c0_i32_20 = arith.constant 0 : i32
    %35 = arith.cmpi ne, %34, %c0_i32_20 : i32
    scf.if %35 {
      %c0_21 = arith.constant 0 : index
      %c0_22 = arith.constant 0 : index
      %36 = vector.load %arg8[%c0_21, %c0_22] : memref<64x1xf32, #tpu.memory_space<vmem>>, vector<64x1xf32>
      %cst_23 = arith.constant 2.000000e+00 : f32
      %37 = vector.broadcast %cst_23 : f32 to vector<64x1xf32>
      %38 = arith.divf %36, %37 : vector<64x1xf32>
      %c0_24 = arith.constant 0 : index
      %c0_25 = arith.constant 0 : index
      %39 = vector.load %arg2[%c0_24, %c0_25] : memref<64x64xf32, #tpu.memory_space<vmem>>, vector<64x64xf32>
      %cst_26 = arith.constant 0.899999976 : f32
      %40 = vector.broadcast %cst_26 : f32 to vector<64x64xf32>
      %41 = arith.mulf %39, %40 : vector<64x64xf32>
      %cst_27 = arith.constant 1.000000e-01 : f32
      %42 = vector.broadcast %cst_27 : f32 to vector<64x1xf32>
      %43 = arith.mulf %38, %42 : vector<64x1xf32>
      %44 = vector.broadcast %43 : vector<64x1xf32> to vector<64x64xf32>
      %45 = arith.addf %41, %44 : vector<64x64xf32>
      %c0_28 = arith.constant 0 : index
      %c0_29 = arith.constant 0 : index
      %46 = vector.load %arg7[%c0_28, %c0_29] : memref<64x64xf32, #tpu.memory_space<vmem>>, vector<64x64xf32>
      tpu.vector_store %arg7[%c0_28, %c0_29], %45 {strides = array<i32>} : memref<64x64xf32, #tpu.memory_space<vmem>>, vector<64x64xf32>,
    } else {
    }
    return
  }
  func.func @transform_0(%arg0: i32) -> (i32, i32, i32) {
    %c0_i32 = arith.constant 0 : i32
    %c0_i32_0 = arith.constant 0 : i32
    %c0_i32_1 = arith.constant 0 : i32
    return %arg0, %c0_i32, %c0_i32_0 : i32, i32, i32
  }
  func.func @transform_1(%arg0: i32) -> (i32, i32) {
    %c0_i32 = arith.constant 0 : i32
    %c0_i32_0 = arith.constant 0 : i32
    %c0_i32_1 = arith.constant 0 : i32
    return %c0_i32, %c0_i32_0 : i32, i32
  }
  func.func @transform_2(%arg0: i32) -> (i32, i32) {
    %c0_i32 = arith.constant 0 : i32
    %c0_i32_0 = arith.constant 0 : i32
    %c0_i32_1 = arith.constant 0 : i32
    return %c0_i32, %c0_i32_0 : i32, i32
  }
  func.func @transform_3(%arg0: i32) -> (i32, i32) {
    %c0_i32 = arith.constant 0 : i32
    %c0_i32_0 = arith.constant 0 : i32
    %c0_i32_1 = arith.constant 0 : i32
    return %c0_i32, %c0_i32_0 : i32, i32
  }
  func.func @transform_4(%arg0: i32) -> (i32, i32) {
    %c0_i32 = arith.constant 0 : i32
    %c0_i32_0 = arith.constant 0 : i32
    %c0_i32_1 = arith.constant 0 : i32
    return %c0_i32, %c0_i32_0 : i32, i32
  }
  func.func @transform_5(%arg0: i32) -> (i32, i32) {
    %c0_i32 = arith.constant 0 : i32
    %c0_i32_0 = arith.constant 0 : i32
    %c0_i32_1 = arith.constant 0 : i32
    return %c0_i32, %c0_i32_0 : i32, i32
  }
  func.func @transform_6(%arg0: i32) -> (i32, i32) {
    %c0_i32 = arith.constant 0 : i32
    %c0_i32_0 = arith.constant 0 : i32
    %c0_i32_1 = arith.constant 0 : i32
    return %c0_i32, %c0_i32_0 : i32, i32
  }
}

module attributes {stable_mosaic.version = 11 : i64} {
  func.func @se_scale_kernel(%arg0: i32, %arg1: i32, %arg2: memref<2x2048xf32, #tpu.memory_space<vmem>>, %arg3: memref<1x2048xf32, #tpu.memory_space<vmem>>, %arg4: memref<2x2048xf32, #tpu.memory_space<vmem>>) attributes {dimension_semantics = [#tpu.dimension_semantics<parallel>, #tpu.dimension_semantics<parallel>], iteration_bounds = array<i64: 1, 2>, scalar_prefetch = 0 : i64, scratch_operands = 0 : i64, tpu.core_type = #tpu.core_type<tc>, window_params = [{transform_indices = @transform_0, window_bounds = array<i64: 2, 2048>}, {transform_indices = @transform_1, window_bounds = array<i64: 1, 2048>}, {transform_indices = @transform_2, window_bounds = array<i64: 2, 2048>}]} {
    %c0 = arith.constant 0 : index
    %c0_0 = arith.constant 0 : index
    %0 = vector.load %arg2[%c0, %c0_0] : memref<2x2048xf32, #tpu.memory_space<vmem>>, vector<2x2048xf32>
    %c0_1 = arith.constant 0 : index
    %c0_2 = arith.constant 0 : index
    %1 = vector.load %arg3[%c0_1, %c0_2] : memref<1x2048xf32, #tpu.memory_space<vmem>>, vector<1x2048xf32>
    %2 = vector.broadcast %1 : vector<1x2048xf32> to vector<2x2048xf32>
    %3 = arith.mulf %0, %2 : vector<2x2048xf32>
    %c0_3 = arith.constant 0 : index
    %c0_4 = arith.constant 0 : index
    %4 = vector.load %arg4[%c0_3, %c0_4] : memref<2x2048xf32, #tpu.memory_space<vmem>>, vector<2x2048xf32>
    tpu.vector_store %arg4[%c0_3, %c0_4], %3 {strides = array<i32>} : memref<2x2048xf32, #tpu.memory_space<vmem>>, vector<2x2048xf32>,
    return
  }
  func.func @transform_0(%arg0: i32, %arg1: i32) -> (i32, i32) {
    %c0_i32 = arith.constant 0 : i32
    return %arg0, %arg1 : i32, i32
  }
  func.func @transform_1(%arg0: i32, %arg1: i32) -> (i32, i32) {
    %c0_i32 = arith.constant 0 : i32
    %c0_i32_0 = arith.constant 0 : i32
    return %c0_i32, %arg1 : i32, i32
  }
  func.func @transform_2(%arg0: i32, %arg1: i32) -> (i32, i32) {
    %c0_i32 = arith.constant 0 : i32
    return %arg0, %arg1 : i32, i32
  }
}

</mosaic_0001>

<bundles_post_ra>
// kernel: se_block_forward.3
= control target key start
LH: loop header
LB: loop body
LE: loop exit
PB: predicated region body
PF: predicated region fallthrough
CT: control target
= control target key end

     0   :  { %s527_s9 = smov 0   ;;  %s529_s10 = smov 0   ;;  %s577_s0 = inlined_call_operand.vmem [shape: f32[2,4096], index: 0, kind: input, shape index: {}]   ;;  %s578_s1 = inlined_call_operand.vmem [shape: f32[1,4096], index: 1, kind: input, shape index: {}]   ;;  %s579_s2 = inlined_call_operand.vmem [shape: f32[2,4096], index: 2, kind: output, shape index: {}]  }
   0x1   :  { %s531_s11 = smov 0  }
   0x2 LB: > { %s21_s12 = sadd.s32 1, %s505_s10  ;;  %p454_p0 = scmp.ge.s32.totalorder %s509_s11, 1  ;;  %s509_s11 = sphi %s531_s11, %s12_s11   ;;  %s505_s10 = sphi %s529_s10, %s581_s10   ;;  %s501_s9 = sphi %s527_s9, %s580_s9  }
   0x3   : > { %p22_p1 = scmp.ge.s32.totalorder %s21_s12, 2  ;;  %p143_p2 = scmp.lt.s32.totalorder %s509_s11, 3 }
   0x5   : > { %s583_s12 = smov (%p22_p1, %s21_s12), 0  ;;  %p144_p3 = pnand %p454_p0, %p143_p2 }
   0x6   : > { %s455_s13 = sshll.u32 (!%p144_p3), %s501_s9, 4 }
   0x7   : > { %147 = sbr.rel (%p144_p3) target bundleno = 35 (0x23), region = 28  ;;  %p180_p4 = scmp.lt.s32.totalorder (!%p144_p3), %s455_s13, 31 }
   0xc   : > { %v210_v0 = vlaneseq  ;;  %v511_v1 = vmov 1983009808   ;;  %s585_s13 = smov (!%p180_p4, %s455_s13), 31 }
   0xd   : > { %v277_v2 = vunpack.c.l.s4 %v511_v1  ;;  %s190_s16 = scalar_lea.vmem %s578_s1, %s585_s13  ;;  %s456_s17 = sshll.u32 %s585_s13, 1 }
   0xe   : > { %v211_v3 = vshrl.u32 %v210_v0, 7  ;;  %v206_v12 = vld [vmem:[%s190_s16] sm:$0xff]  ;;  %v207_v13 = vld [vmem:[%s190_s16 + $0x8] sm:$0xff]  ;;  %s557_s20 = scalar_lea.vmem %s577_s0, %s456_s17  ;;  %s200_s23 = scalar_lea.vmem %s579_s2, %s456_s17 }
   0xf   : > { %v278_v4 = vunpack.c.0.s8 %v277_v2  ;;  %v202_v36 = vld [vmem:[%s557_s20] sm:$0xff]  ;;  %v203_v42 = vld [vmem:[%s557_s20 + $0x8] sm:$0xff]  ;;  %v204_v50 = vld [vmem:[%s557_s20 + $0x10] sm:$0xff] }
  0x10   : > { %v212_v5 = vsub.s32 0, %v211_v3  ;;  %v216_v6 = vsub.s32 1, %v211_v3  ;;  %v220_v7 = vsub.s32 2, %v211_v3  ;;  %v224_v8 = vsub.s32 3, %v211_v3  ;;  %v205_v57 = vld [vmem:[%s557_s20 + $0x18] sm:$0xff] }
  0x11   : > { %v228_v9 = vsub.s32 4, %v211_v3  ;;  %v232_v10 = vsub.s32 5, %v211_v3  ;;  %v236_v11 = vsub.s32 6, %v211_v3  ;;  %v281_v14 = vsub.s32 %v278_v4, %v211_v3 }
  0x12   : > { %v240_v15 = vsub.s32 7, %v211_v3  ;;  %v213_v16 = vrot.slane %v206_v12, %v212_v5  ;;  %v217_v17 = vrot.slane %v206_v12, %v216_v6  ;;  %v221_v18 = vrot.slane %v206_v12, %v220_v7 }
  0x13   : > { %v225_v19 = vrot.slane %v206_v12, %v224_v8  ;;  %v229_v20 = vrot.slane %v206_v12, %v228_v9  ;;  %v233_v21 = vrot.slane %v206_v12, %v232_v10  ;;  %v237_v22 = vrot.slane %v206_v12, %v236_v11 }
  0x14   : > { %v241_v23 = vrot.slane %v206_v12, %v240_v15  ;;  %v274_v24 = vcombine.low %v213_v16, %v217_v17  ;;  %v245_v26 = vrot.slane %v207_v13, %v212_v5  ;;  %v249_v27 = vrot.slane %v207_v13, %v216_v6 }
  0x15   : > { %v275_v25 = vcombine.low %v221_v18, %v225_v19  ;;  %v291_v28 = vcombine.low %v229_v20, %v233_v21  ;;  %v253_v30 = vrot.slane %v207_v13, %v220_v7  ;;  %v257_v31 = vrot.slane %v207_v13, %v224_v8 }
  0x16   : > { %v292_v29 = vcombine.low %v237_v22, %v241_v23  ;;  %v282_v32 = vrot.slane %v274_v24, %v281_v14  ;;  %v308_v34 = vcombine.low %v245_v26, %v249_v27  ;;  %v261_v35 = vrot.slane %v207_v13, %v228_v9 }
  0x17   : > { %v289_v33 = vrot.slane %v275_v25, %v281_v14  ;;  %v299_v37 = vrot.slane %v291_v28, %v281_v14  ;;  %v309_v39 = vcombine.low %v253_v30, %v257_v31  ;;  %v265_v40 = vrot.slane %v207_v13, %v232_v10 }
  0x18   : > { %v306_v38 = vrot.slane %v292_v29, %v281_v14  ;;  %v316_v43 = vrot.slane %v308_v34, %v281_v14  ;;  %v269_v44 = vrot.slane %v207_v13, %v236_v11  ;;  %v273_v45 = vrot.slane %v207_v13, %v240_v15 }
  0x19   : > { %v290_v41 = vcombine.low %v282_v32, %v289_v33  ;;  %v323_v47 = vrot.slane %v309_v39, %v281_v14  ;;  %v325_v48 = vcombine.low %v261_v35, %v265_v40 }
  0x1a   : > { %v307_v46 = vcombine.low %v299_v37, %v306_v38  ;;  %v326_v51 = vcombine.low %v269_v44, %v273_v45 }
  0x1b   : > { %v346_v49 = vmul.f32 %v290_v41, %v202_v36  ;;  %v324_v53 = vcombine.low %v316_v43, %v323_v47  ;;  %v333_v54 = vrot.slane %v325_v48, %v281_v14 }
  0x1c   : > { %v347_v52 = vmul.f32 %v307_v46, %v203_v42  ;;  %v340_v55 = vrot.slane %v326_v51, %v281_v14 }
  0x1d   : > { %350 = vst [vmem:[%s200_s23] sm:$0xff] %v346_v49  ;;  %v348_v56 = vmul.f32 %v324_v53, %v204_v50 }
  0x1e   : > { %351 = vst [vmem:[%s200_s23 + $0x8] sm:$0xff] %v347_v52  ;;  %v341_v58 = vcombine.low %v333_v54, %v340_v55 }
  0x1f   : > { %352 = vst [vmem:[%s200_s23 + $0x10] sm:$0xff] %v348_v56 }
  0x20   : > { %v349_v59 = vmul.f32 %v341_v58, %v205_v57 }
  0x22   : > { %353 = vst [vmem:[%s200_s23 + $0x18] sm:$0xff] %v349_v59 }
  0x23 PF: > { %s12_s11 = sadd.s32 1, %s509_s11   ;;  %s580_s9 = smov %s505_s10 }
  0x24   : > { %p9_p5 = scmp.ge.s32.totalorder %s12_s11, 4   ;;  %s581_s10 = smov %s583_s12 }
  0x26   :  { %11 = sbr.rel (!%p9_p5) target bundleno = 2 (0x2), region = 61 }

// kernel: se_block_forward.2
= control target key start
LH: loop header
LB: loop body
LE: loop exit
PB: predicated region body
PF: predicated region fallthrough
CT: control target
= control target key end

     0   :  { %s703_s21 = smov 0   ;;  %s896_s0 = inlined_call_operand.vmem [shape: f32[2,64,64], index: 0, kind: input, shape index: {}]   ;;  %s897_s1 = inlined_call_operand.vmem [shape: f32[64,64], index: 1, kind: input, shape index: {}, may-alias: {1,6}]   ;;  %s898_s2 = inlined_call_operand.vmem [shape: f32[64,4], index: 2, kind: input, shape index: {}]   ;;  %s899_s3 = inlined_call_operand.vmem [shape: f32[1,4], index: 3, kind: input, shape index: {}]   ;;  %s900_s4 = inlined_call_operand.vmem [shape: f32[64,4], index: 4, kind: input, shape index: {}]   ;;  %s901_s5 = inlined_call_operand.vmem [shape: f32[64,1], index: 5, kind: input, shape index: {}]   ;;  %s902_s6 = inlined_call_operand.vmem [shape: f32[64,64], index: 6, kind: output, shape index: {}, may-alias: {1,6}]  }
   0x1 LB: > { %s709_s22 = sadd.s32 4294967295, %s664_s21   ;;  %p598_p0 = scmp.ge.s32.totalorder %s664_s21, 1  ;;  %s664_s21 = sphi %s703_s21, %s16_s21  }
   0x2   : > { %p207_p1 = scmp.lt.s32.totalorder %s664_s21, 3 }
   0x4   : > { %p208_p2 = pnand %p598_p0, %p207_p1 }
   0x5   : > { %p232_p3 = scmp.lt.s32.totalorder (!%p208_p2), %s709_s22, 1  ;;  %p601_p4 = scmp.ne.s32.totalorder (!%p208_p2), %s709_s22, 0 }
   0x6   : > { %211 = sbr.rel (%p208_p2) target bundleno = 538 (0x21a), region = 44 }
   0xb   : > { %s233_s23 = scalar_select %p232_p3, %s709_s22, 1 }
   0xc   : > { %240 = sbr.rel (%p601_p4) target bundleno = 22 (0x16), region = 48 }
   0xd   : > { %s613_s24 = sshll.u32 %s233_s23, 6 }
   0xe   : > { %s718_s27 = scalar_lea.vmem %s896_s0, %s613_s24 }
  0x11   : > { %vm241_vm0 = vcmask 7168   ;;  %v666_v0 = vmov 0.0  }
  0x12   : > { %242 = vst.msk [vmem:[#allocation2] sm:$0xff] %vm241_vm0, %v666_v0  ;;  %243 = vst.msk [vmem:[#allocation2 + $0x8] sm:$0xff] %vm241_vm0, %v666_v0 }
  0x13   : > { %244 = vst.msk [vmem:[#allocation2 + $0x10] sm:$0xff] %vm241_vm0, %v666_v0  ;;  %245 = vst.msk [vmem:[#allocation2 + $0x18] sm:$0xff] %vm241_vm0, %v666_v0 }
  0x14   : > { %246 = vst.msk [vmem:[#allocation2 + $0x20] sm:$0xff] %vm241_vm0, %v666_v0  ;;  %247 = vst.msk [vmem:[#allocation2 + $0x28] sm:$0xff] %vm241_vm0, %v666_v0 }
  0x15   : > { %248 = vst.msk [vmem:[#allocation2 + $0x30] sm:$0xff] %vm241_vm0, %v666_v0  ;;  %249 = vst.msk [vmem:[#allocation2 + $0x38] sm:$0xff] %vm241_vm0, %v666_v0 }
  0x16 PF: > { %v250_v1 = vld [vmem:[%s718_s27] sm:$0xff]  ;;  %vm258_vm1 = vcmask 523264   ;;  %v252_v2 = vld [vmem:[%s718_s27 + $0x10] sm:$0xff]  ;;  %v251_v3 = vld [vmem:[%s718_s27 + $0x8] sm:$0xff]  ;;  %vm308_vm2 = vcmask 31744   ;;  %vm457_vm3 = vcmask 7168  }
  0x17   : > { %v259_v4 = vsel %vm258_vm1, %v250_v1, 0.0  ;;  %v265_v5 = vsel %vm258_vm1, %v252_v2, 0.0  ;;  %v253_v6 = vld [vmem:[%s718_s27 + $0x18] sm:$0xff]  ;;  %v262_v7 = vsel %vm258_vm1, %v251_v3, 0.0  ;;  %v254_v9 = vld [vmem:[%s718_s27 + $0x20] sm:$0xff]  ;;  %v255_v10 = vld [vmem:[%s718_s27 + $0x28] sm:$0xff]  ;;  %v341_v2 = vlaneseq }
  0x18   : > { %260 = vadd.xlane.f32.xlu0 %v259_v4  ;;  %266 = vadd.xlane.f32.xlu1 %v265_v5  ;;  %v268_v8 = vsel %vm258_vm1, %v253_v6, 0.0  ;;  %v271_v11 = vsel %vm258_vm1, %v254_v9, 0.0  ;;  %v274_v12 = vsel %vm258_vm1, %v255_v10, 0.0  ;;  %v256_v13 = vld [vmem:[%s718_s27 + $0x30] sm:$0xff]  ;;  %v257_v14 = vld [vmem:[%s718_s27 + $0x38] sm:$0xff]  ;;  %v292_v20 = vld [vmem:[%s898_s2] sm:$0xff] }
  0x19   : > { %v277_v15 = vsel %vm258_vm1, %v256_v13, 0.0  ;;  %v280_v16 = vsel %vm258_vm1, %v257_v14, 0.0  ;;  %v294_v22 = vld [vmem:[%s898_s2 + $0x10] sm:$0xff]  ;;  %v293_v23 = vld [vmem:[%s898_s2 + $0x8] sm:$0xff]  ;;  %v295_v25 = vld [vmem:[%s898_s2 + $0x18] sm:$0xff]  ;;  %v342_v5 = vshrl.u32 %v341_v2, 7 }
  0x1a   : > { %v296_v33 = vld [vmem:[%s898_s2 + $0x20] sm:$0xff]  ;;  %v297_v35 = vld [vmem:[%s898_s2 + $0x28] sm:$0xff]  ;;  %v298_v47 = vld [vmem:[%s898_s2 + $0x30] sm:$0xff]  ;;  %p610_p5 = scmp.ne.s32.totalorder %s709_s22, 1 }
  0x1b   : > { %v299_v49 = vld [vmem:[%s898_s2 + $0x38] sm:$0xff]  ;;  %v343_v9 = vsub.s32 0, %v342_v5  ;;  %v333_v13 = vld [vmem:[%s900_s4] sm:$0xff] }
  0x1c   : > { %263 = vadd.xlane.f32.xlu0 %v262_v7  ;;  %269 = vadd.xlane.f32.xlu1 %v268_v8  ;;  %v330_v7 = vld [vmem:[%s899_s3] sm:$0x1] }
  0x20   : > { %272 = vadd.xlane.f32.xlu0 %v271_v11  ;;  %275 = vadd.xlane.f32.xlu1 %v274_v12  ;;  %v334_v12 = vld [vmem:[%s900_s4 + $0x8] sm:$0xff] }
  0x24   : > { %278 = vadd.xlane.f32.xlu0 %v277_v15  ;;  %281 = vadd.xlane.f32.xlu1 %v280_v16  ;;  %v336_v15 = vld [vmem:[%s900_s4 + $0x18] sm:$0xff]  ;;  %v335_v16 = vld [vmem:[%s900_s4 + $0x10] sm:$0xff] }
  0xa1   : > { %v261_v17 = vpop.xlane.xlu0 %260  ;;  %v267_v18 = vpop.xlane.xlu1 %266 }
  0xa2   : > { %v284_v19 = vmul.f32 0.015625, %v261_v17  ;;  %v286_v21 = vmul.f32 0.015625, %v267_v18 }
  0xa4   : > { %v300_v27 = vmul.f32 %v292_v20, %v284_v19  ;;  %v302_v30 = vmul.f32 %v294_v22, %v286_v21 }
  0xa5   : > { %v264_v24 = vpop.xlane.xlu0 %263  ;;  %v270_v26 = vpop.xlane.xlu1 %269 }
  0xa6   : > { %v285_v28 = vmul.f32 0.015625, %v264_v24  ;;  %v287_v29 = vmul.f32 0.015625, %v270_v26  ;;  %v309_v37 = vsel %vm308_vm2, %v300_v27, 0.0  ;;  %v312_v42 = vsel %vm308_vm2, %v302_v30, 0.0  ;;  %v337_v24 = vld [vmem:[%s900_s4 + $0x20] sm:$0xff]  ;;  %v339_v30 = vld [vmem:[%s900_s4 + $0x30] sm:$0xff] }
  0xa8   : > { %v301_v31 = vmul.f32 %v293_v23, %v285_v28  ;;  %v303_v32 = vmul.f32 %v295_v25, %v287_v29  ;;  %v338_v23 = vld [vmem:[%s900_s4 + $0x28] sm:$0xff]  ;;  %v340_v29 = vld [vmem:[%s900_s4 + $0x38] sm:$0xff] }
  0xa9   : > { %v273_v34 = vpop.xlane.xlu0 %272  ;;  %v276_v36 = vpop.xlane.xlu1 %275 }
  0xaa   : > { %v310_v38 = vsel %vm308_vm2, %v301_v31, 0.0  ;;  %v288_v39 = vmul.f32 0.015625, %v273_v34  ;;  %v289_v40 = vmul.f32 0.015625, %v276_v36  ;;  %v314_v43 = vsel %vm308_vm2, %v303_v32, 0.0 }
  0xab   : > { %v311_v41 = vadd.f32 %v310_v38, %v309_v37  ;;  %v378_v37 = vld [vmem:[%s901_s5 + $0x8] sm:$0xff]  ;;  %v377_v38 = vld [vmem:[%s901_s5] sm:$0xff] }
  0xac   : > { %v304_v44 = vmul.f32 %v296_v33, %v288_v39  ;;  %v305_v45 = vmul.f32 %v297_v35, %v289_v40 }
  0xad   : > { %v313_v46 = vadd.f32 %v312_v42, %v311_v41  ;;  %v279_v48 = vpop.xlane.xlu0 %278  ;;  %v282_v50 = vpop.xlane.xlu1 %281 }
  0xae   : > { %v316_v51 = vsel %vm308_vm2, %v304_v44, 0.0  ;;  %v290_v52 = vmul.f32 0.015625, %v279_v48  ;;  %v291_v53 = vmul.f32 0.015625, %v282_v50  ;;  %v318_v55 = vsel %vm308_vm2, %v305_v45, 0.0  ;;  %v379_v44 = vld [vmem:[%s901_s5 + $0x10] sm:$0xff] }
  0xaf   : > { %v315_v54 = vadd.f32 %v314_v43, %v313_v46  ;;  %v380_v43 = vld [vmem:[%s901_s5 + $0x18] sm:$0xff] }
  0xb0   : > { %v306_v56 = vmul.f32 %v298_v47, %v290_v52  ;;  %v307_v57 = vmul.f32 %v299_v49, %v291_v53  ;;  %v381_v52 = vld [vmem:[%s901_s5 + $0x20] sm:$0xff] }
  0xb1   : > { %v317_v58 = vadd.f32 %v316_v51, %v315_v54  ;;  %v382_v51 = vld [vmem:[%s901_s5 + $0x28] sm:$0xff] }
  0xb2   : > { %v320_v59 = vsel %vm308_vm2, %v306_v56, 0.0  ;;  %v322_v61 = vsel %vm308_vm2, %v307_v57, 0.0 }
  0xb3   : > { %v319_v60 = vadd.f32 %v318_v55, %v317_v58 }
  0xb5   : > { %v321_v62 = vadd.f32 %v320_v59, %v319_v60  ;;  %v384_v59 = vld [vmem:[%s901_s5 + $0x38] sm:$0xff]  ;;  %v383_v60 = vld [vmem:[%s901_s5 + $0x30] sm:$0xff] }
  0xb7   : > { %v323_v63 = vadd.f32 %v322_v61, %v321_v62 }
  0xb9   : > { %v324_v0 = vrot.slane %v323_v63, 4 }
  0xbb   : > { %v325_v1 = vadd.f32 %v324_v0, %v323_v63 }
  0xbd   : > { %v326_v3 = vrot.slane %v325_v1, 2 }
  0xbf   : > { %v327_v4 = vadd.f32 %v326_v3, %v325_v1 }
  0xc1   : > { %v328_v6 = vrot.slane %v327_v4, 1 }
  0xc3   : > { %v329_v8 = vadd.f32 %v328_v6, %v327_v4 }
  0xc5   : > { %v331_v10 = vadd.f32 %v330_v7, %v329_v8 }
  0xc7   : > { %v332_v11 = vmax.f32 %v331_v10, 0.0 }
  0xc9   : > { %v344_v14 = vrot.slane %v332_v11, %v343_v9 }
  0xcb   : > { %v346_v17 = vmul.f32 %v344_v14, %v334_v12  ;;  %v345_v18 = vmul.f32 %v344_v14, %v333_v13  ;;  %v348_v21 = vmul.f32 %v344_v14, %v336_v15  ;;  %v347_v22 = vmul.f32 %v344_v14, %v335_v16 }
  0xcc   : > { %v350_v27 = vmul.f32 %v344_v14, %v338_v23  ;;  %v349_v28 = vmul.f32 %v344_v14, %v337_v24  ;;  %v352_v33 = vmul.f32 %v344_v14, %v340_v29  ;;  %v351_v34 = vmul.f32 %v344_v14, %v339_v30 }
  0xcd   : > { %v356_v19 = vsel %vm308_vm2, %v346_v17, 0.0  ;;  %v353_v20 = vsel %vm308_vm2, %v345_v18, 0.0  ;;  %v362_v25 = vsel %vm308_vm2, %v348_v21, 0.0  ;;  %v359_v26 = vsel %vm308_vm2, %v347_v22, 0.0  ;;  %v441_v22 = vld [vmem:[#allocation2] sm:$0xff] }
  0xce   : > { %357 = vadd.xlane.f32.xlu1 %v356_v19  ;;  %354 = vadd.xlane.f32.xlu0 %v353_v20  ;;  %v368_v31 = vsel %vm308_vm2, %v350_v27, 0.0  ;;  %v365_v32 = vsel %vm308_vm2, %v349_v28, 0.0  ;;  %v374_v35 = vsel %vm308_vm2, %v352_v33, 0.0  ;;  %v371_v36 = vsel %vm308_vm2, %v351_v34, 0.0  ;;  %v442_v20 = vld [vmem:[#allocation2 + $0x8] sm:$0xff]  ;;  %v444_v27 = vld [vmem:[#allocation2 + $0x18] sm:$0xff] }
  0xcf   : > { %v443_v28 = vld [vmem:[#allocation2 + $0x10] sm:$0xff]  ;;  %v446_v33 = vld [vmem:[#allocation2 + $0x28] sm:$0xff]  ;;  %v445_v34 = vld [vmem:[#allocation2 + $0x20] sm:$0xff] }
  0xd2   : > { %363 = vadd.xlane.f32.xlu1 %v362_v25  ;;  %360 = vadd.xlane.f32.xlu0 %v359_v26 }
  0xd6   : > { %369 = vadd.xlane.f32.xlu1 %v368_v31  ;;  %366 = vadd.xlane.f32.xlu0 %v365_v32 }
  0xda   : > { %375 = vadd.xlane.f32.xlu1 %v374_v35  ;;  %372 = vadd.xlane.f32.xlu0 %v371_v36 }
 0x157   : > { %v358_v39 = vpop.xlane.xlu1 %357  ;;  %v355_v40 = vpop.xlane.xlu0 %354 }
 0x158   : > { %v386_v41 = vadd.f32 %v378_v37, %v358_v39  ;;  %v385_v42 = vadd.f32 %v377_v38, %v355_v40  ;;  %v448_v39 = vld [vmem:[#allocation2 + $0x38] sm:$0xff]  ;;  %v447_v40 = vld [vmem:[#allocation2 + $0x30] sm:$0xff] }
 0x15a   : > { %v603_v45 = vmul.f32 -1.442695, %v386_v41  ;;  %v602_v46 = vmul.f32 -1.442695, %v385_v42 }
 0x15b   : > { %v364_v47 = vpop.xlane.xlu1 %363  ;;  %v361_v48 = vpop.xlane.xlu0 %360 }
 0x15c   : > { %624 = vpow2.f32 %v603_v45  ;;  %v388_v49 = vadd.f32 %v380_v43, %v364_v47  ;;  %v387_v50 = vadd.f32 %v379_v44, %v361_v48 }
 0x15d   : > { %626 = vpow2.f32 %v602_v46 }
 0x15e   : > { %v605_v53 = vmul.f32 -1.442695, %v388_v49  ;;  %v604_v54 = vmul.f32 -1.442695, %v387_v50 }
 0x15f   : > { %v370_v55 = vpop.xlane.xlu1 %369  ;;  %v367_v56 = vpop.xlane.xlu0 %366 }
 0x160   : > { %628 = vpow2.f32 %v605_v53  ;;  %v390_v57 = vadd.f32 %v382_v51, %v370_v55  ;;  %v389_v58 = vadd.f32 %v381_v52, %v367_v56 }
 0x161   : > { %630 = vpow2.f32 %v604_v54 }
 0x162   : > { %v607_v61 = vmul.f32 -1.442695, %v390_v57  ;;  %v606_v62 = vmul.f32 -1.442695, %v389_v58 }
 0x163   : > { %v376_v63 = vpop.xlane.xlu1 %375  ;;  %v373_v0 = vpop.xlane.xlu0 %372 }
 0x164   : > { %632 = vpow2.f32 %v607_v61  ;;  %v392_v1 = vadd.f32 %v384_v59, %v376_v63  ;;  %v391_v2 = vadd.f32 %v383_v60, %v373_v0 }
 0x165   : > { %634 = vpow2.f32 %v606_v62 }
 0x166   : > { %v609_v3 = vmul.f32 -1.442695, %v392_v1  ;;  %v608_v4 = vmul.f32 -1.442695, %v391_v2 }
 0x168   : > { %636 = vpow2.f32 %v609_v3 }
 0x169   : > { %v625_v5 = vpop.eup %624  ;;  %638 = vpow2.f32 %v608_v4 }
 0x16a   : > { %v627_v6 = vpop.eup %626  ;;  %v418_v7 = vadd.f32 1.0, %v625_v5 }
 0x16b   : > { %v417_v8 = vadd.f32 1.0, %v627_v6 }
 0x16c   : > { %640 = vrcp.f32 %v418_v7 }
 0x16d   : > { %v629_v9 = vpop.eup %628  ;;  %642 = vrcp.f32 %v417_v8 }
 0x16e   : > { %v631_v10 = vpop.eup %630  ;;  %v420_v11 = vadd.f32 1.0, %v629_v9 }
 0x16f   : > { %v419_v12 = vadd.f32 1.0, %v631_v10 }
 0x170   : > { %644 = vrcp.f32 %v420_v11 }
 0x171   : > { %v633_v13 = vpop.eup %632  ;;  %646 = vrcp.f32 %v419_v12 }
 0x172   : > { %v635_v14 = vpop.eup %634  ;;  %v422_v15 = vadd.f32 1.0, %v633_v13 }
 0x173   : > { %v421_v16 = vadd.f32 1.0, %v635_v14 }
 0x174   : > { %648 = vrcp.f32 %v422_v15 }
 0x175   : > { %v637_v17 = vpop.eup %636  ;;  %650 = vrcp.f32 %v421_v16 }
 0x176   : > { %v639_v18 = vpop.eup %638  ;;  %v424_v19 = vadd.f32 1.0, %v637_v17 }
 0x177   : > { %v423_v21 = vadd.f32 1.0, %v639_v18 }
 0x178   : > { %652 = vrcp.f32 %v424_v19 }
 0x179   : > { %v641_v23 = vpop.eup %640  ;;  %654 = vrcp.f32 %v423_v21 }
 0x17a   : > { %v643_v24 = vpop.eup %642  ;;  %v450_v25 = vadd.f32 %v641_v23, %v442_v20 }
 0x17b   : > { %v449_v26 = vadd.f32 %v643_v24, %v441_v22 }
 0x17c   : > { %459 = vst.msk [vmem:[#allocation2 + $0x8] sm:$0xff] %vm457_vm3, %v450_v25 }
 0x17d   : > { %v645_v29 = vpop.eup %644  ;;  %458 = vst.msk [vmem:[#allocation2] sm:$0xff] %vm457_vm3, %v449_v26 }
 0x17e   : > { %v647_v30 = vpop.eup %646  ;;  %v452_v31 = vadd.f32 %v645_v29, %v444_v27 }
 0x17f   : > { %v451_v32 = vadd.f32 %v647_v30, %v443_v28 }
 0x180   : > { %461 = vst.msk [vmem:[#allocation2 + $0x18] sm:$0xff] %vm457_vm3, %v452_v31 }
 0x181   : > { %v649_v35 = vpop.eup %648  ;;  %460 = vst.msk [vmem:[#allocation2 + $0x10] sm:$0xff] %vm457_vm3, %v451_v32 }
 0x182   : > { %v651_v36 = vpop.eup %650  ;;  %v454_v37 = vadd.f32 %v649_v35, %v446_v33 }
 0x183   : > { %v453_v38 = vadd.f32 %v651_v36, %v445_v34 }
 0x184   : > { %463 = vst.msk [vmem:[#allocation2 + $0x28] sm:$0xff] %vm457_vm3, %v454_v37 }
 0x185   : > { %v653_v41 = vpop.eup %652  ;;  %462 = vst.msk [vmem:[#allocation2 + $0x20] sm:$0xff] %vm457_vm3, %v453_v38  ;;  %469 = sbr.rel (%p610_p5) target bundleno = 538 (0x21a), region = 52 }
 0x186   : > { %v655_v42 = vpop.eup %654  ;;  %v456_v43 = vadd.f32 %v653_v41, %v448_v39 }
 0x187   : > { %v455_v44 = vadd.f32 %v655_v42, %v447_v40 }
 0x188   : > { %465 = vst.msk [vmem:[#allocation2 + $0x38] sm:$0xff] %vm457_vm3, %v456_v43 }
 0x189   : > { %464 = vst.msk [vmem:[#allocation2 + $0x30] sm:$0xff] %vm457_vm3, %v455_v44 }
 0x18a   : > { %v472_v45 = vld [vmem:[#allocation2 + $0x10] sm:$0xff]  ;;  %v470_v46 = vld [vmem:[#allocation2] sm:$0xff]  ;;  %v473_v47 = vld [vmem:[#allocation2 + $0x18] sm:$0xff]  ;;  %v667_v48 = vmov 0  }
 0x18b   : > { %657 = vset.pattern.permute.xlu1 %v667_v48  ;;  %656 = vset.pattern.permute.xlu0 %v667_v48  ;;  %v481_v49 = vmul.f32 0.5, %v472_v45  ;;  %v479_v50 = vmul.f32 0.5, %v470_v46  ;;  %v482_v51 = vmul.f32 0.5, %v473_v47  ;;  %v471_v52 = vld [vmem:[#allocation2 + $0x8] sm:$0xff]  ;;  %v489_v6 = vld [vmem:[%s897_s1 + $0x10] sm:$0xff]  ;;  %v487_v7 = vld [vmem:[%s897_s1] sm:$0xff] }
 0x18c   : > { %v480_v53 = vmul.f32 0.5, %v471_v52  ;;  %v475_v54 = vld [vmem:[#allocation2 + $0x28] sm:$0xff]  ;;  %v474_v55 = vld [vmem:[#allocation2 + $0x20] sm:$0xff]  ;;  %v497_v8 = vmul.f32 0.9, %v489_v6  ;;  %v490_v10 = vld [vmem:[%s897_s1 + $0x18] sm:$0xff] }
 0x18d   : > { %v505_v56 = vmul.f32 0.1, %v481_v49  ;;  %v503_v57 = vmul.f32 0.1, %v479_v50  ;;  %v506_v58 = vmul.f32 0.1, %v482_v51 }
 0x18e   : > { %v504_v59 = vmul.f32 0.1, %v480_v53  ;;  %v484_v60 = vmul.f32 0.5, %v475_v54  ;;  %v483_v61 = vmul.f32 0.5, %v474_v55  ;;  %v495_v9 = vmul.f32 0.9, %v487_v7 }
 0x18f   : > { %523 = vperm.xlu1 %657, %v505_v56   ;;  %513 = vperm.xlu0 %656, %v503_v57   ;;  %v477_v62 = vld [vmem:[#allocation2 + $0x38] sm:$0xff]  ;;  %v488_v11 = vld [vmem:[%s897_s1 + $0x8] sm:$0xff]  ;;  %v498_v16 = vmul.f32 0.9, %v490_v10  ;;  %v491_v19 = vld [vmem:[%s897_s1 + $0x20] sm:$0xff] }
 0x190   : > { %v476_v63 = vld [vmem:[#allocation2 + $0x30] sm:$0xff]  ;;  %v508_v0 = vmul.f32 0.1, %v484_v60  ;;  %v507_v1 = vmul.f32 0.1, %v483_v61  ;;  %v486_v2 = vmul.f32 0.5, %v477_v62 }
 0x191   : > { %v485_v3 = vmul.f32 0.5, %v476_v63  ;;  %v496_v17 = vmul.f32 0.9, %v488_v11  ;;  %v492_v18 = vld [vmem:[%s897_s1 + $0x28] sm:$0xff]  ;;  %v499_v25 = vmul.f32 0.9, %v491_v19 }
 0x192   : > { %v510_v4 = vmul.f32 0.1, %v486_v2  ;;  %v500_v24 = vmul.f32 0.9, %v492_v18 }
 0x193   : > { %528 = vperm.xlu1 %657, %v506_v58   ;;  %518 = vperm.xlu0 %656, %v504_v59   ;;  %v509_v5 = vmul.f32 0.1, %v485_v3 }
 0x197   : > { %538 = vperm.xlu1 %657, %v508_v0   ;;  %533 = vperm.xlu0 %656, %v507_v1  }
 0x19b   : > { %548 = vperm.xlu1 %657, %v510_v4   ;;  %543 = vperm.xlu0 %656, %v509_v5  }
 0x20a   : > { %v524_v12 = vpop.permute.xlu1 %523  ;;  %v514_v13 = vpop.permute.xlu0 %513 }
 0x20b   : > { %v553_v14 = vadd.f32 %v524_v12, %v497_v8  ;;  %v551_v15 = vadd.f32 %v514_v13, %v495_v9 }
 0x20d   : > { %561 = vst.msk [vmem:[%s902_s6 + $0x10] sm:$0xff] %vm258_vm1, %v553_v14  ;;  %559 = vst.msk [vmem:[%s902_s6] sm:$0xff] %vm258_vm1, %v551_v15 }
 0x20e   : > { %v529_v20 = vpop.permute.xlu1 %528  ;;  %v519_v21 = vpop.permute.xlu0 %518 }
 0x20f   : > { %v554_v22 = vadd.f32 %v529_v20, %v498_v16  ;;  %v552_v23 = vadd.f32 %v519_v21, %v496_v17 }
 0x212   : > { %v539_v28 = vpop.permute.xlu1 %538  ;;  %v534_v29 = vpop.permute.xlu0 %533 }
 0x213   : > { %v556_v30 = vadd.f32 %v539_v28, %v500_v24  ;;  %v555_v31 = vadd.f32 %v534_v29, %v499_v25 }
 0x214   : > { %v494_v26 = vld [vmem:[%s897_s1 + $0x38] sm:$0xff]  ;;  %v493_v27 = vld [vmem:[%s897_s1 + $0x30] sm:$0xff] }
 0x215   : > { %562 = vst.msk [vmem:[%s902_s6 + $0x18] sm:$0xff] %vm258_vm1, %v554_v22  ;;  %560 = vst.msk [vmem:[%s902_s6 + $0x8] sm:$0xff] %vm258_vm1, %v552_v23  ;;  %v502_v32 = vmul.f32 0.9, %v494_v26  ;;  %v501_v33 = vmul.f32 0.9, %v493_v27 }
 0x216   : > { %564 = vst.msk [vmem:[%s902_s6 + $0x28] sm:$0xff] %vm258_vm1, %v556_v30  ;;  %563 = vst.msk [vmem:[%s902_s6 + $0x20] sm:$0xff] %vm258_vm1, %v555_v31  ;;  %v549_v34 = vpop.permute.xlu1 %548  ;;  %v544_v35 = vpop.permute.xlu0 %543 }
 0x217   : > { %v558_v36 = vadd.f32 %v549_v34, %v502_v32  ;;  %v557_v37 = vadd.f32 %v544_v35, %v501_v33 }
 0x219   : > { %566 = vst.msk [vmem:[%s902_s6 + $0x38] sm:$0xff] %vm258_vm1, %v558_v36  ;;  %565 = vst.msk [vmem:[%s902_s6 + $0x30] sm:$0xff] %vm258_vm1, %v557_v37 }
 0x21a PF: > { %s16_s21 = sadd.s32 1, %s664_s21  }
 0x21b   : > { %p13_p6 = scmp.ge.s32.totalorder %s16_s21, 4  }
 0x21d   :  { %15 = sbr.rel (!%p13_p6) target bundleno = 1 (0x1), region = 78 }

</bundles_post_ra>
